<compile_context>
chip_gen: v5e
topology: v5e:2x2
jax: 0.10.0
libtpu: 0.0.40
codegen_flags: <defaults>
</compile_context>

<pallas_src>
import numpy as np
import jax
import jax.numpy as jnp
from jax.experimental import pallas as pl
from jax.experimental.pallas import tpu as pltpu

MEAN_R, MEAN_G, MEAN_B = 0.485, 0.456, 0.406
STD_R,  STD_G,  STD_B  = 0.229, 0.456, 0.225   # std_g = 0.456 as in the module spec

_LANE = 128
_SUBLANE = 8
_TARGET_BLOCK_BYTES = 2 * 1024 * 1024  # ~2 MiB tile


def _normalize_kernel(x_ref, scale_ref, bias_ref, o_ref):
    # (x - mean) / std  ==  x * (1/std) + (-mean/std), one VPU mul + add.
    # scale/bias are (block_rows, 1) f32 and broadcast across the lane dim.
    x = x_ref[...].astype(jnp.float32)
    o_ref[...] = (x * scale_ref[...] + bias_ref[...]).astype(o_ref.dtype)


def _pick_block(rows, cols, itemsize):
    """Pick a lane-dense (block_rows, block_cols) tile of roughly _TARGET_BLOCK_BYTES.

    Block dims are either multiples of (8, 128) or equal to the full array dims,
    satisfying the TPU BlockSpec tiling constraint.
    """
    total = rows * cols * itemsize
    if total <= _TARGET_BLOCK_BYTES:
        return rows, cols                              # single tile, full dims
    if _SUBLANE * cols * itemsize <= _TARGET_BLOCK_BYTES:
        # Keep the full lane-dense width; tile rows in multiples of 8.
        br = (_TARGET_BLOCK_BYTES // (cols * itemsize)) // _SUBLANE * _SUBLANE
        br = max(_SUBLANE, br)
        if br >= rows:
            br = rows
        return br, cols
    # Even an 8-row sliver is too big: tile columns too (multiples of 128).
    bc = (_TARGET_BLOCK_BYTES // (_SUBLANE * itemsize)) // _LANE * _LANE
    bc = max(_LANE, bc)
    if bc >= cols:
        bc = cols
    br = _SUBLANE if rows > _SUBLANE else rows
    return br, bc


def normalize_it(x):
    """Functional Pallas equivalent of NormalizeIt.forward (returns a new array)."""
    B, C, H, W = x.shape
    rows, cols = B * C, H * W

    # Per-channel scale/bias; channels >= 3 pass through (scale=1, bias=0).
    means = np.zeros((C,), np.float32)
    stds = np.ones((C,), np.float32)
    for c, (m, s) in enumerate(((MEAN_R, STD_R), (MEAN_G, STD_G), (MEAN_B, STD_B))):
        if c < C:
            means[c] = m
            stds[c] = s
    scale_c = (1.0 / stds).astype(np.float32)
    bias_c = (-means / stds).astype(np.float32)

    # Per-row (= per (b, c) plane) scale/bias, shape (B*C, 1).
    scale = jnp.broadcast_to(jnp.asarray(scale_c)[None, :], (B, C)).reshape(rows, 1)
    bias = jnp.broadcast_to(jnp.asarray(bias_c)[None, :], (B, C)).reshape(rows, 1)

    x2 = x.reshape(rows, cols)  # lane-dense: H*W on the lane axis (free view)
    itemsize = jnp.dtype(x.dtype).itemsize
    br, bc = _pick_block(rows, cols, itemsize)
    grid = (pl.cdiv(rows, br), pl.cdiv(cols, bc))

    out = pl.pallas_call(
        _normalize_kernel,
        out_shape=jax.ShapeDtypeStruct((rows, cols), x.dtype),
        grid=grid,
        in_specs=[
            pl.BlockSpec((br, bc), lambda i, j: (i, j)),   # x tile
            pl.BlockSpec((br, 1), lambda i, j: (i, 0)),    # scale rows
            pl.BlockSpec((br, 1), lambda i, j: (i, 0)),    # bias rows
        ],
        out_specs=pl.BlockSpec((br, bc), lambda i, j: (i, j)),
        compiler_params=pltpu.CompilerParams(
            dimension_semantics=("parallel", "parallel"),
        ),
    )(x2, scale, bias)
    return out.reshape(B, C, H, W)


if __name__ == "__main__":
    key = jax.random.PRNGKey(0)
    B, C, H, W = 2, 4, 16, 16  # channel 3 exercises the pass-through path
    x = jax.random.uniform(key, (B, C, H, W), dtype=jnp.float32)

    out = jax.block_until_ready(normalize_it(x))

    # Reference: exact semantics of the PyTorch forward (channels 0..2 only).
    ref = x
    ref = ref.at[:, 0].set((x[:, 0] - MEAN_R) / STD_R)
    ref = ref.at[:, 1].set((x[:, 1] - MEAN_G) / STD_G)
    ref = ref.at[:, 2].set((x[:, 2] - MEAN_B) / STD_B)
    assert jnp.allclose(out, ref, atol=1e-5, rtol=1e-5), float(
        jnp.max(jnp.abs(out - ref))
    )

    print("KERNEL_OK")
</pallas_src>

<mosaic_0001>
module attributes {stable_mosaic.version = 11 : i64} {
  func.func @_normalize_kernel(%arg0: i32, %arg1: i32, %arg2: memref<8x256xf32, #tpu.memory_space<vmem>>, %arg3: memref<8x1xf32, #tpu.memory_space<vmem>>, %arg4: memref<8x1xf32, #tpu.memory_space<vmem>>, %arg5: memref<8x256xf32, #tpu.memory_space<vmem>>) attributes {dimension_semantics = [#tpu.dimension_semantics<parallel>, #tpu.dimension_semantics<parallel>], iteration_bounds = array<i64: 1, 1>, scalar_prefetch = 0 : i64, scratch_operands = 0 : i64, tpu.core_type = #tpu.core_type<tc>, window_params = [{transform_indices = @transform_0, window_bounds = array<i64: 8, 256>}, {transform_indices = @transform_1, window_bounds = array<i64: 8, 1>}, {transform_indices = @transform_2, window_bounds = array<i64: 8, 1>}, {transform_indices = @transform_3, window_bounds = array<i64: 8, 256>}]} {
    %c0 = arith.constant 0 : index
    %c0_0 = arith.constant 0 : index
    %0 = vector.load %arg2[%c0, %c0_0] : memref<8x256xf32, #tpu.memory_space<vmem>>, vector<8x256xf32>
    %c0_1 = arith.constant 0 : index
    %c0_2 = arith.constant 0 : index
    %1 = vector.load %arg3[%c0_1, %c0_2] : memref<8x1xf32, #tpu.memory_space<vmem>>, vector<8x1xf32>
    %2 = vector.broadcast %1 : vector<8x1xf32> to vector<8x256xf32>
    %3 = arith.mulf %0, %2 : vector<8x256xf32>
    %c0_3 = arith.constant 0 : index
    %c0_4 = arith.constant 0 : index
    %4 = vector.load %arg4[%c0_3, %c0_4] : memref<8x1xf32, #tpu.memory_space<vmem>>, vector<8x1xf32>
    %5 = vector.broadcast %4 : vector<8x1xf32> to vector<8x256xf32>
    %6 = arith.addf %3, %5 : vector<8x256xf32>
    %c0_5 = arith.constant 0 : index
    %c0_6 = arith.constant 0 : index
    %7 = vector.load %arg5[%c0_5, %c0_6] : memref<8x256xf32, #tpu.memory_space<vmem>>, vector<8x256xf32>
    tpu.vector_store %arg5[%c0_5, %c0_6], %6 {strides = array<i32>} : memref<8x256xf32, #tpu.memory_space<vmem>>, vector<8x256xf32>,
    return
  }
  func.func @transform_0(%arg0: i32, %arg1: i32) -> (i32, i32) {
    %c0_i32 = arith.constant 0 : i32
    return %arg0, %arg1 : i32, i32
  }
  func.func @transform_1(%arg0: i32, %arg1: i32) -> (i32, i32) {
    %c0_i32 = arith.constant 0 : i32
    %c0_i32_0 = arith.constant 0 : i32
    return %arg0, %c0_i32 : i32, i32
  }
  func.func @transform_2(%arg0: i32, %arg1: i32) -> (i32, i32) {
    %c0_i32 = arith.constant 0 : i32
    %c0_i32_0 = arith.constant 0 : i32
    return %arg0, %c0_i32 : i32, i32
  }
  func.func @transform_3(%arg0: i32, %arg1: i32) -> (i32, i32) {
    %c0_i32 = arith.constant 0 : i32
    return %arg0, %arg1 : i32, i32
  }
}

</mosaic_0001>

<bundles_post_ra>
// kernel: tpu_custom_call.1
= control target key start
LH: loop header
LB: loop body
LE: loop exit
PB: predicated region body
PF: predicated region fallthrough
CT: control target
= control target key end

     0   :  { %s117_s0 = inlined_call_operand.vmem [shape: f32[8,256], index: 0, kind: input, shape index: {}]   ;;  %s118_s1 = inlined_call_operand.vmem [shape: f32[8,1], index: 1, kind: input, shape index: {}]   ;;  %s119_s2 = inlined_call_operand.vmem [shape: f32[8,1], index: 2, kind: input, shape index: {}]   ;;  %s120_s3 = inlined_call_operand.hbm [shape: f32[8,256], index: 3, kind: output, shape index: {}]  }
   0x1   :  { %v17_v0 = vld [vmem:[%s118_s1] sm:$0xff] }
   0x2   :  { %8 = vsyncpa [#allocation3], 0  ;;  %v80_v1 = vmov 0   ;;  %v25_v2 = vld [vmem:[%s119_s2] sm:$0xff]  ;;  %v16_v5 = vld [vmem:[%s117_s0 + $0x8] sm:$0xff]  ;;  %s81_s1 = smov [#allocation2]  }
   0x3   :  { %53 = vset.pattern.permute.xlu0 %v80_v1  ;;  %v15_v4 = vld [vmem:[%s117_s0] sm:$0xff]  ;;  %s40_s20 = sshll.u32 %s81_s1, 4  ;;  %s42_s23 = sshll.u32 %s120_s3, 4  ;;  %s41_s20 = int_to_ptr.vmem [resolvable:$true] %s40_s20  ;;  %s43_s23 = int_to_ptr.hbm [resolvable:$true] %s42_s23 }
   0x4   :  { %20 = vperm.xlu0 %53, %v17_v0  }
   0xc   :  { %28 = vperm.xlu0 %53, %v25_v2  }
  0x76   :  { %v21_v3 = vpop.permute.xlu0 %20 }
  0x77   :  { %v23_v6 = vmul.f32 %v21_v3, %v15_v4  ;;  %v24_v7 = vmul.f32 %v21_v3, %v16_v5 }
  0x7e   :  { %v29_v8 = vpop.permute.xlu0 %28 }
  0x7f   :  { %v31_v9 = vadd.f32 %v29_v8, %v23_v6  ;;  %v32_v10 = vadd.f32 %v29_v8, %v24_v7 }
  0x81   :  { %33 = vst [vmem:[#allocation2] sm:$0xff] %v31_v9 }
  0x82   :  { %34 = vst [vmem:[#allocation2 + $0x8] sm:$0xff] %v32_v10 }
  0x83   :  { %45 = dma.vmem_to_hbm [thread:$0]  %s41_s20, 256, %s43_s23, [#allocation3]  }
  0x84   :  { %78 = dma.done.wait [#allocation3], 256  }
  0x85   :  { %79 = vsyncadd [#allocation3], 4294967040 }
  0x86   :  { %50 = vsyncpa [#allocation3], 1 }

</bundles_post_ra>
